<compile_context>
chip_gen: v5e
topology: v5e:2x2
jax: 0.10.0
libtpu: 0.0.40
codegen_flags: <defaults>
</compile_context>

<pallas_src>
import functools

import jax
import jax.numpy as jnp
from jax.experimental import pallas as pl
from jax.experimental.pallas import tpu as pltpu


def _round_up(x, m):
    return (x + m - 1) // m * m


def _hash_u32(x):
    """splitmix32-style finalizer on uint32 vectors."""
    x = x ^ (x >> 16)
    x = x * jnp.uint32(0x7FEB352D)
    x = x ^ (x >> 15)
    x = x * jnp.uint32(0x846CA68B)
    x = x ^ (x >> 16)
    return x


def _uniform01(shape, seed, stream, row_offset):
    """Per-element uniform in [0, 1) from a counter-based hash.

    `row_offset` is the global batch-row index of this tile's first row, so
    different grid steps (and the h / v streams) draw decorrelated bits.
    """
    rows = jax.lax.broadcasted_iota(jnp.uint32, shape, 0) + row_offset
    cols = jax.lax.broadcasted_iota(jnp.uint32, shape, 1)
    salt = jnp.uint32((seed * 0x9E3779B1 + stream * 0x85EBCA77 + 1) & 0xFFFFFFFF)
    x = rows * jnp.uint32(0x01000193) + cols
    bits = _hash_u32(_hash_u32(x ^ salt) + jnp.uint32(0x9E3779B9))
    # 24 high-ish bits -> uniform in [0, 1)
    return (bits >> 8).astype(jnp.int32).astype(jnp.float32) * jnp.float32(1.0 / (1 << 24))


def _rbm_kernel(v_ref, w_ref, hb_ref, vb_ref, out_ref, *, seed):
    tb, nv = out_ref.shape           # batch tile, padded n_visible
    nh = w_ref.shape[0]              # padded n_hidden
    row0 = (pl.program_id(0) * tb).astype(jnp.uint32)   # global row offset for RNG streams

    v = v_ref[...].astype(w_ref.dtype)   # (TB, Nv) bf16 ({0,1} data is exact in bf16)
    w = w_ref[...]                       # (Nh, Nv) bf16, VMEM-resident across grid steps

    # ---- v -> h : p(h=1|v) = sigmoid(v @ W.T + h_bias), without forming W.T ----
    logits_h = jax.lax.dot_general(
        v, w, dimension_numbers=(((1,), (1,)), ((), ())),
        preferred_element_type=jnp.float32) + hb_ref[...]
    p_h = jax.nn.sigmoid(logits_h)                                   # (TB, Nh) f32
    u_h = _uniform01((tb, nh), seed, 0, row0)
    sample_h = jnp.where(u_h < p_h, 1.0, 0.0)                        # bernoulli(p_h)

    # ---- h -> v : p(v=1|h) = sigmoid(h @ W + v_bias) ----
    logits_v = jax.lax.dot_general(
        sample_h.astype(w.dtype), w,
        dimension_numbers=(((1,), (0,)), ((), ())),
        preferred_element_type=jnp.float32) + vb_ref[...]
    p_v = jax.nn.sigmoid(logits_v)                                   # (TB, Nv) f32
    u_v = _uniform01((tb, nv), seed, 1, row0)
    out_ref[...] = jnp.where(u_v < p_v, 1.0, 0.0).astype(out_ref.dtype)


def rbm_forward(v, W, h_bias, v_bias, seed, *, batch_tile=None):
    """v: (B, Nv), W: (Nh, Nv), h_bias: (Nh,), v_bias: (Nv,), seed: python int."""
    B, Nv = v.shape
    Nh = W.shape[0]

    nv_p = _round_up(Nv, 128)                      # lane-dense last dims
    nh_p = _round_up(Nh, 128)
    if batch_tile is None:
        batch_tile = 256                           # MXU-height tiles for large B
    tb = _round_up(min(batch_tile, _round_up(B, 8)), 8)   # sublane-aligned batch tile
    b_p = _round_up(B, tb)

    # Zero-padding is exact: padded W rows/cols and biases are zero, padded
    # output rows/cols are sliced off below.
    v_p = jnp.zeros((b_p, nv_p), jnp.float32).at[:B, :Nv].set(v.astype(jnp.float32))
    w_p = jnp.zeros((nh_p, nv_p), jnp.bfloat16).at[:Nh, :Nv].set(W.astype(jnp.bfloat16))
    hb_p = jnp.zeros((1, nh_p), jnp.float32).at[0, :Nh].set(h_bias.astype(jnp.float32))
    vb_p = jnp.zeros((1, nv_p), jnp.float32).at[0, :Nv].set(v_bias.astype(jnp.float32))

    out = pl.pallas_call(
        functools.partial(_rbm_kernel, seed=int(seed)),
        out_shape=jax.ShapeDtypeStruct((b_p, nv_p), jnp.float32),
        grid=(b_p // tb,),
        in_specs=[
            pl.BlockSpec((tb, nv_p), lambda i: (i, 0)),     # v tile: streamed / pipelined
            pl.BlockSpec((nh_p, nv_p), lambda i: (0, 0)),   # W: resident across grid steps
            pl.BlockSpec((1, nh_p), lambda i: (0, 0)),      # h_bias row
            pl.BlockSpec((1, nv_p), lambda i: (0, 0)),      # v_bias row
        ],
        out_specs=pl.BlockSpec((tb, nv_p), lambda i: (i, 0)),
        compiler_params=pltpu.CompilerParams(
            dimension_semantics=("parallel",),          # shard batch axis across TCs (v7x)
            vmem_limit_bytes=48 * 1024 * 1024,          # headroom vs v7x's 64 MiB VMEM
        ),
    )(v_p, w_p, hb_p, vb_p)
    return out[:B, :Nv]


if __name__ == "__main__":
    # Small shapes consistent with the module (n_hidden=83, MNIST-ish n_visible),
    # deliberately NOT multiples of 128 to exercise the padding path, and a
    # small batch tile so the grid has several steps.
    B, n_visible, n_hidden = 24, 196, 83

    key = jax.random.PRNGKey(0)
    k_w, k_v = jax.random.split(key)

    # Mirrors __init__: W ~ randn(n_hidden, n_visible) * 0.01, biases = 0.
    W = jax.random.normal(k_w, (n_hidden, n_visible), dtype=jnp.float32) * 0.01
    h_bias = jnp.zeros((n_hidden,), dtype=jnp.float32)
    v_bias = jnp.zeros((n_visible,), dtype=jnp.float32)

    # Binary visible input (standard RBM data).
    v_in = (jax.random.uniform(k_v, (B, n_visible)) > 0.5).astype(jnp.float32)

    out = rbm_forward(v_in, W, h_bias, v_bias, seed=1234, batch_tile=8)
    out = jax.block_until_ready(out)

    assert out.shape == (B, n_visible)
    assert out.dtype == jnp.float32
    # Gibbs samples must be binary.
    assert bool(jnp.all((out == 0.0) | (out == 1.0)))
    print("KERNEL_OK")
</pallas_src>

<mosaic_0001>
module attributes {stable_mosaic.version = 11 : i64} {
  func.func @_rbm_kernel(%arg0: i32, %arg1: memref<8x256xf32, #tpu.memory_space<vmem>>, %arg2: memref<128x256xbf16, #tpu.memory_space<vmem>>, %arg3: memref<1x128xf32, #tpu.memory_space<vmem>>, %arg4: memref<1x256xf32, #tpu.memory_space<vmem>>, %arg5: memref<8x256xf32, #tpu.memory_space<vmem>>) attributes {dimension_semantics = [#tpu.dimension_semantics<parallel>], iteration_bounds = array<i64: 3>, scalar_prefetch = 0 : i64, scratch_operands = 0 : i64, tpu.core_type = #tpu.core_type<tc>, window_params = [{transform_indices = @transform_0, window_bounds = array<i64: 8, 256>}, {pipeline_mode = #tpu.pipeline_mode<synchronous>, transform_indices = @transform_1, window_bounds = array<i64: 128, 256>}, {pipeline_mode = #tpu.pipeline_mode<synchronous>, transform_indices = @transform_2, window_bounds = array<i64: 1, 128>}, {pipeline_mode = #tpu.pipeline_mode<synchronous>, transform_indices = @transform_3, window_bounds = array<i64: 1, 256>}, {transform_indices = @transform_4, window_bounds = array<i64: 8, 256>}]} {
    %c8_i32 = arith.constant 8 : i32
    %0 = arith.muli %arg0, %c8_i32 : i32
    %c0 = arith.constant 0 : index
    %c0_0 = arith.constant 0 : index
    %1 = vector.load %arg1[%c0, %c0_0] : memref<8x256xf32, #tpu.memory_space<vmem>>, vector<8x256xf32>
    %2 = arith.truncf %1 : vector<8x256xf32> to vector<8x256xbf16>
    %c0_1 = arith.constant 0 : index
    %c0_2 = arith.constant 0 : index
    %3 = vector.load %arg2[%c0_1, %c0_2] : memref<128x256xbf16, #tpu.memory_space<vmem>>, vector<128x256xbf16>
    %cst = arith.constant dense<0.000000e+00> : vector<8x128xf32>
    %4 = tpu.matmul %2, %3, %cst {dimension_numbers = #tpu.dot_dimension_numbers<[1], [1], [0], [0], [0, 0, 1, 0], [], []>} : vector<8x256xbf16>, vector<128x256xbf16>, vector<8x128xf32> -> vector<8x128xf32>
    %c0_3 = arith.constant 0 : index
    %c0_4 = arith.constant 0 : index
    %5 = vector.load %arg3[%c0_3, %c0_4] : memref<1x128xf32, #tpu.memory_space<vmem>>, vector<1x128xf32>
    %6 = vector.broadcast %5 : vector<1x128xf32> to vector<8x128xf32>
    %7 = arith.addf %4, %6 : vector<8x128xf32>
    %8 = arith.negf %7 : vector<8x128xf32>
    %9 = math.exp %8 : vector<8x128xf32>
    %cst_5 = arith.constant 1.000000e+00 : f32
    %10 = vector.broadcast %cst_5 : f32 to vector<8x128xf32>
    %11 = arith.addf %10, %9 : vector<8x128xf32>
    %12 = arith.divf %10, %11 : vector<8x128xf32>
    %13 = tpu.iota {dimensions = array<i32: 0>} : vector<8x128xi32>
    %14 = vector.broadcast %0 : i32 to vector<8x128xi32>
    %15 = arith.addi %13, %14 : vector<8x128xi32>
    %16 = tpu.iota {dimensions = array<i32: 1>} : vector<8x128xi32>
    %c16777619_i32 = arith.constant 16777619 : i32
    %17 = vector.broadcast %c16777619_i32 : i32 to vector<8x128xi32>
    %18 = arith.muli %15, %17 : vector<8x128xi32>
    %19 = arith.addi %18, %16 : vector<8x128xi32>
    %c-1486317773_i32 = arith.constant -1486317773 : i32
    %20 = vector.broadcast %c-1486317773_i32 : i32 to vector<8x128xi32>
    %21 = arith.xori %19, %20 : vector<8x128xi32>
    %c16_i32 = arith.constant 16 : i32
    %22 = vector.broadcast %c16_i32 : i32 to vector<8x128xi32>
    %23 = arith.shrui %21, %22 : vector<8x128xi32>
    %24 = arith.xori %21, %23 : vector<8x128xi32>
    %c2146121005_i32 = arith.constant 2146121005 : i32
    %25 = vector.broadcast %c2146121005_i32 : i32 to vector<8x128xi32>
    %26 = arith.muli %24, %25 : vector<8x128xi32>
    %c15_i32 = arith.constant 15 : i32
    %27 = vector.broadcast %c15_i32 : i32 to vector<8x128xi32>
    %28 = arith.shrui %26, %27 : vector<8x128xi32>
    %29 = arith.xori %26, %28 : vector<8x128xi32>
    %c-2073254261_i32 = arith.constant -2073254261 : i32
    %30 = vector.broadcast %c-2073254261_i32 : i32 to vector<8x128xi32>
    %31 = arith.muli %29, %30 : vector<8x128xi32>
    %c16_i32_6 = arith.constant 16 : i32
    %32 = vector.broadcast %c16_i32_6 : i32 to vector<8x128xi32>
    %33 = arith.shrui %31, %32 : vector<8x128xi32>
    %34 = arith.xori %31, %33 : vector<8x128xi32>
    %c-1640531527_i32 = arith.constant -1640531527 : i32
    %35 = vector.broadcast %c-1640531527_i32 : i32 to vector<8x128xi32>
    %36 = arith.addi %34, %35 : vector<8x128xi32>
    %c16_i32_7 = arith.constant 16 : i32
    %37 = vector.broadcast %c16_i32_7 : i32 to vector<8x128xi32>
    %38 = arith.shrui %36, %37 : vector<8x128xi32>
    %39 = arith.xori %36, %38 : vector<8x128xi32>
    %c2146121005_i32_8 = arith.constant 2146121005 : i32
    %40 = vector.broadcast %c2146121005_i32_8 : i32 to vector<8x128xi32>
    %41 = arith.muli %39, %40 : vector<8x128xi32>
    %c15_i32_9 = arith.constant 15 : i32
    %42 = vector.broadcast %c15_i32_9 : i32 to vector<8x128xi32>
    %43 = arith.shrui %41, %42 : vector<8x128xi32>
    %44 = arith.xori %41, %43 : vector<8x128xi32>
    %c-2073254261_i32_10 = arith.constant -2073254261 : i32
    %45 = vector.broadcast %c-2073254261_i32_10 : i32 to vector<8x128xi32>
    %46 = arith.muli %44, %45 : vector<8x128xi32>
    %c16_i32_11 = arith.constant 16 : i32
    %47 = vector.broadcast %c16_i32_11 : i32 to vector<8x128xi32>
    %48 = arith.shrui %46, %47 : vector<8x128xi32>
    %49 = arith.xori %46, %48 : vector<8x128xi32>
    %c8_i32_12 = arith.constant 8 : i32
    %50 = vector.broadcast %c8_i32_12 : i32 to vector<8x128xi32>
    %51 = arith.shrui %49, %50 : vector<8x128xi32>
    %52 = arith.sitofp %51 : vector<8x128xi32> to vector<8x128xf32>
    %cst_13 = arith.constant 5.96046448E-8 : f32
    %53 = vector.broadcast %cst_13 : f32 to vector<8x128xf32>
    %54 = arith.mulf %52, %53 : vector<8x128xf32>
    %55 = arith.cmpf olt, %54, %12 : vector<8x128xf32>
    %cst_14 = arith.constant 1.000000e+00 : f32
    %cst_15 = arith.constant 0.000000e+00 : f32
    %56 = vector.broadcast %cst_14 : f32 to vector<8x128xf32>
    %57 = vector.broadcast %cst_15 : f32 to vector<8x128xf32>
    %58 = arith.select %55, %56, %57 : vector<8x128xi1>, vector<8x128xf32>
    %59 = arith.truncf %58 : vector<8x128xf32> to vector<8x128xbf16>
    %cst_16 = arith.constant dense<0.000000e+00> : vector<8x256xf32>
    %60 = tpu.matmul %59, %3, %cst_16 {dimension_numbers = #tpu.dot_dimension_numbers<[1], [0], [0], [1], [0, 0, 1, 1], [], []>} : vector<8x128xbf16>, vector<128x256xbf16>, vector<8x256xf32> -> vector<8x256xf32>
    %c0_17 = arith.constant 0 : index
    %c0_18 = arith.constant 0 : index
    %61 = vector.load %arg4[%c0_17, %c0_18] : memref<1x256xf32, #tpu.memory_space<vmem>>, vector<1x256xf32>
    %62 = vector.broadcast %61 : vector<1x256xf32> to vector<8x256xf32>
    %63 = arith.addf %60, %62 : vector<8x256xf32>
    %64 = arith.negf %63 : vector<8x256xf32>
    %65 = math.exp %64 : vector<8x256xf32>
    %cst_19 = arith.constant 1.000000e+00 : f32
    %66 = vector.broadcast %cst_19 : f32 to vector<8x256xf32>
    %67 = arith.addf %66, %65 : vector<8x256xf32>
    %68 = arith.divf %66, %67 : vector<8x256xf32>
    %69 = tpu.iota {dimensions = array<i32: 0>} : vector<8x256xi32>
    %70 = vector.broadcast %0 : i32 to vector<8x256xi32>
    %71 = arith.addi %69, %70 : vector<8x256xi32>
    %72 = tpu.iota {dimensions = array<i32: 1>} : vector<8x256xi32>
    %c16777619_i32_20 = arith.constant 16777619 : i32
    %73 = vector.broadcast %c16777619_i32_20 : i32 to vector<8x256xi32>
    %74 = arith.muli %71, %73 : vector<8x256xi32>
    %75 = arith.addi %74, %72 : vector<8x256xi32>
    %c760504746_i32 = arith.constant 760504746 : i32
    %76 = vector.broadcast %c760504746_i32 : i32 to vector<8x256xi32>
    %77 = arith.xori %75, %76 : vector<8x256xi32>
    %c16_i32_21 = arith.constant 16 : i32
    %78 = vector.broadcast %c16_i32_21 : i32 to vector<8x256xi32>
    %79 = arith.shrui %77, %78 : vector<8x256xi32>
    %80 = arith.xori %77, %79 : vector<8x256xi32>
    %c2146121005_i32_22 = arith.constant 2146121005 : i32
    %81 = vector.broadcast %c2146121005_i32_22 : i32 to vector<8x256xi32>
    %82 = arith.muli %80, %81 : vector<8x256xi32>
    %c15_i32_23 = arith.constant 15 : i32
    %83 = vector.broadcast %c15_i32_23 : i32 to vector<8x256xi32>
    %84 = arith.shrui %82, %83 : vector<8x256xi32>
    %85 = arith.xori %82, %84 : vector<8x256xi32>
    %c-2073254261_i32_24 = arith.constant -2073254261 : i32
    %86 = vector.broadcast %c-2073254261_i32_24 : i32 to vector<8x256xi32>
    %87 = arith.muli %85, %86 : vector<8x256xi32>
    %c16_i32_25 = arith.constant 16 : i32
    %88 = vector.broadcast %c16_i32_25 : i32 to vector<8x256xi32>
    %89 = arith.shrui %87, %88 : vector<8x256xi32>
    %90 = arith.xori %87, %89 : vector<8x256xi32>
    %c-1640531527_i32_26 = arith.constant -1640531527 : i32
    %91 = vector.broadcast %c-1640531527_i32_26 : i32 to vector<8x256xi32>
    %92 = arith.addi %90, %91 : vector<8x256xi32>
    %c16_i32_27 = arith.constant 16 : i32
    %93 = vector.broadcast %c16_i32_27 : i32 to vector<8x256xi32>
    %94 = arith.shrui %92, %93 : vector<8x256xi32>
    %95 = arith.xori %92, %94 : vector<8x256xi32>
    %c2146121005_i32_28 = arith.constant 2146121005 : i32
    %96 = vector.broadcast %c2146121005_i32_28 : i32 to vector<8x256xi32>
    %97 = arith.muli %95, %96 : vector<8x256xi32>
    %c15_i32_29 = arith.constant 15 : i32
    %98 = vector.broadcast %c15_i32_29 : i32 to vector<8x256xi32>
    %99 = arith.shrui %97, %98 : vector<8x256xi32>
    %100 = arith.xori %97, %99 : vector<8x256xi32>
    %c-2073254261_i32_30 = arith.constant -2073254261 : i32
    %101 = vector.broadcast %c-2073254261_i32_30 : i32 to vector<8x256xi32>
    %102 = arith.muli %100, %101 : vector<8x256xi32>
    %c16_i32_31 = arith.constant 16 : i32
    %103 = vector.broadcast %c16_i32_31 : i32 to vector<8x256xi32>
    %104 = arith.shrui %102, %103 : vector<8x256xi32>
    %105 = arith.xori %102, %104 : vector<8x256xi32>
    %c8_i32_32 = arith.constant 8 : i32
    %106 = vector.broadcast %c8_i32_32 : i32 to vector<8x256xi32>
    %107 = arith.shrui %105, %106 : vector<8x256xi32>
    %108 = arith.sitofp %107 : vector<8x256xi32> to vector<8x256xf32>
    %cst_33 = arith.constant 5.96046448E-8 : f32
    %109 = vector.broadcast %cst_33 : f32 to vector<8x256xf32>
    %110 = arith.mulf %108, %109 : vector<8x256xf32>
    %111 = arith.cmpf olt, %110, %68 : vector<8x256xf32>
    %cst_34 = arith.constant 1.000000e+00 : f32
    %cst_35 = arith.constant 0.000000e+00 : f32
    %112 = vector.broadcast %cst_34 : f32 to vector<8x256xf32>
    %113 = vector.broadcast %cst_35 : f32 to vector<8x256xf32>
    %114 = arith.select %111, %112, %113 : vector<8x256xi1>, vector<8x256xf32>
    %c0_36 = arith.constant 0 : index
    %c0_37 = arith.constant 0 : index
    %115 = vector.load %arg5[%c0_36, %c0_37] : memref<8x256xf32, #tpu.memory_space<vmem>>, vector<8x256xf32>
    tpu.vector_store %arg5[%c0_36, %c0_37], %114 {strides = array<i32>} : memref<8x256xf32, #tpu.memory_space<vmem>>, vector<8x256xf32>,
    return
  }
  func.func @transform_0(%arg0: i32) -> (i32, i32) {
    %c0_i32 = arith.constant 0 : i32
    %c0_i32_0 = arith.constant 0 : i32
    return %arg0, %c0_i32 : i32, i32
  }
  func.func @transform_1(%arg0: i32) -> (i32, i32) {
    %c0_i32 = arith.constant 0 : i32
    %c0_i32_0 = arith.constant 0 : i32
    %c0_i32_1 = arith.constant 0 : i32
    return %c0_i32, %c0_i32_0 : i32, i32
  }
  func.func @transform_2(%arg0: i32) -> (i32, i32) {
    %c0_i32 = arith.constant 0 : i32
    %c0_i32_0 = arith.constant 0 : i32
    %c0_i32_1 = arith.constant 0 : i32
    return %c0_i32, %c0_i32_0 : i32, i32
  }
  func.func @transform_3(%arg0: i32) -> (i32, i32) {
    %c0_i32 = arith.constant 0 : i32
    %c0_i32_0 = arith.constant 0 : i32
    %c0_i32_1 = arith.constant 0 : i32
    return %c0_i32, %c0_i32_0 : i32, i32
  }
  func.func @transform_4(%arg0: i32) -> (i32, i32) {
    %c0_i32 = arith.constant 0 : i32
    %c0_i32_0 = arith.constant 0 : i32
    return %arg0, %c0_i32 : i32, i32
  }
}

</mosaic_0001>

<bundles_post_ra>
// kernel: tpu_custom_call.1
= control target key start
LH: loop header
LB: loop body
LE: loop exit
PB: predicated region body
PF: predicated region fallthrough
CT: control target
= control target key end

     0   :  { %9 = vsyncpa [#allocation3], 0  ;;  %s1195_s0 = inlined_call_operand.hbm [shape: f32[24,256], index: 0, kind: input, shape index: {}]   ;;  %s1196_s1 = inlined_call_operand.hbm [shape: bf16[128,256], index: 1, kind: input, shape index: {}]   ;;  %s1197_s2 = inlined_call_operand.hbm [shape: f32[1,128], index: 2, kind: input, shape index: {}]   ;;  %s1198_s3 = inlined_call_operand.vmem [shape: f32[1,256], index: 3, kind: input, shape index: {}]   ;;  %s1199_s4 = inlined_call_operand.hbm [shape: f32[24,256], index: 4, kind: output, shape index: {}]  }
   0x1   :  { %11 = vsyncpa [#allocation3 + $0x1], 0 }
   0x2   :  { %12 = vsyncpa [#allocation6], 0 }
   0x3   :  { %13 = vsyncpa [#allocation4], 0 }
   0x4   :  { %15 = vsyncpa [#allocation4 + $0x1], 0  ;;  %s1040_s15 = smov 0   ;;  %s1042_s16 = smov 0  }
   0x5   :  { %s1044_s17 = smov 0   ;;  %s1046_s18 = smov 0  }
   0x6 LB: > { %s152_s21 = sshll.u32 %s1196_s1, 4  ;;  %s1064_s22 = sadd.s32 4294967295, %s1007_s18   ;;  %s1007_s18 = sphi %s1046_s18, %s1209_s18   ;;  %s1003_s17 = sphi %s1044_s17, %s1208_s17   ;;  %s999_s16 = sphi %s1042_s16, %s1207_s16   ;;  %s995_s15 = sphi %s1040_s15, %s1206_s15   ;;  %s153_s21 = int_to_ptr.hbm [resolvable:$true] %s152_s21 }
   0x7   : > { %p656_p0 = scmp.ge.s32.totalorder %s1007_s18, 1  ;;  %p42_p1 = scmp.eq.s32.totalorder %s1064_s22, 0 }
   0x8   : > { %p141_p2 = scmp.lt.s32.totalorder %s1007_s18, 4  ;;  %s1009_s24 = smov [#allocation5]  }
   0x9   : > { %s154_s25 = sshll.u32 %s1009_s24, 4  ;;  %s167_s28 = sshll.u32 %s1197_s2, 4  ;;  %s155_s25 = int_to_ptr.vmem [resolvable:$true] %s154_s25  ;;  %s168_s28 = int_to_ptr.hbm [resolvable:$true] %s167_s28 }
   0xa   : > { %p1069_p3 = pnand %p656_p0, %p141_p2  ;;  %s1010_s29 = smov [#allocation7]  }
   0xb   : > { %s169_s30 = sshll.u32 %s1010_s29, 4  ;;  %s1011_s5 = smov 128   ;;  %s170_s30 = int_to_ptr.vmem [resolvable:$true] %s169_s30 }
   0xc   : > { %p775_p4 = pneg %p1069_p3  ;;  %s1012_s6 = smov 8  }
   0xd   : > { %s655_s7 = sadd.s32 4294967294, %s1007_s18   ;;  %s1082_s8 = sadd.s32 1, %s1007_s18  }
   0xe   : > { %p776_p5 = pnand %p775_p4, %p42_p1  ;;  %s25_s9 = ssub.s32 %s1007_s18, %s1082_s8 }
   0xf   : > { %s28_s10 = sadd.s32 1, %s1003_s17  ;;  %p26_p6 = scmp.eq.s32.totalorder %s25_s9, 0 }
  0x10   : > { %778 = dma.hbm_to_vmem [thread:$0]  (!%p776_p5), %s153_s21, 2048, %s155_s25, [#allocation6], %s1011_s5, %s1011_s5, %s1012_s6  }
  0x11   : > { %781 = dma.hbm_to_vmem [thread:$0]  (!%p776_p5), %s168_s28, 16, %s170_s30, [#allocation6]  }
  0x12   : > { %p35_p7 = scmp.ne.s32.totalorder %s1003_s17, %s999_s16  ;;  %p36_p8 = scmp.eq.s32.totalorder %s1007_s18, 0 }
  0x13   : > { %p41_p9 = scmp.ne.s32.totalorder %s999_s16, %s995_s15  ;;  %p128_p12 = scmp.eq.s32.totalorder %s1064_s22, 2 }
  0x14   : > { %s1093_s11 = scalar_select %p26_p6, %s1003_s17, %s28_s10  }
  0x15   : > { %p1095_p10 = por %p36_p8, %p35_p7  ;;  %p1101_p11 = por %p42_p1, %p41_p9 }
  0x16   : > { %p134_p13 = scmp.eq.s32.totalorder %s655_s7, 2  ;;  %p792_p0 = scmp.lt.s32.totalorder %s1007_s18, 3 }
  0x17   : > { %s183_s14 = sand.u32 1, %s1003_s17   ;;  %p1108_p2 = por %p128_p12, %p35_p7 }
  0x18   : > { %p1112_p4 = por %p134_p13, %p41_p9  ;;  %s660_s21 = sshll.u32 %s183_s14, 4 }
  0x19   : > { %s745_s24 = sshll.u32 %s1007_s18, 4  ;;  %s187_s28 = scalar_lea.vmem [#allocation2], %s660_s21 }
  0x1a   : > { %s192_s27 = scalar_lea.hbm %s1195_s0, %s745_s24  ;;  %s196_s29 = sshll.u32 %s187_s28, 4  ;;  %s197_s29 = int_to_ptr.vmem [resolvable:$true] %s196_s29 }
  0x1b   : > { %s194_s30 = sshll.u32 %s192_s27, 4  ;;  %p1122_p5 = pnand %p792_p0, %p1095_p10  ;;  %s195_s30 = int_to_ptr.hbm [resolvable:$true] %s194_s30 }
  0x1c   : > { %s184_s6 = scalar_lea.sflag [#allocation3], %s183_s14  ;;  %s907_s7 = sshra.s32 %s195_s30, 4  ;;  %s908_s7 = int_to_ptr.hbm [resolvable:$true] %s907_s7 }
  0x1d   : > { %s909_s9 = scalar_lea.hbm %s908_s7, 16  ;;  %p911_p7 = pneg %p1122_p5 }
  0x1e   : > { %p910_p6 = scmp.ne.s32.totalorder %s908_s7, %s909_s9  ;;  %s914_s24 = scalar_lea.hbm %s1195_s0, 48 }
  0x1f   : > { %p915_p10 = scmp.lt.s32.totalorder %s908_s7, %s1195_s0  ;;  %p916_p12 = scmp.lt.s32.totalorder %s914_s24, %s909_s9 }
  0x20   : > { %p912_p8 = pnand %p911_p7, %p910_p6 }
  0x21   : > { %p917_p13 = por %p916_p12, %p915_p10 }
  0x22   : > { %p913_p9 = pneg %p912_p8 }
  0x24   : > { %p918_p0 = pnand %p917_p13, %p913_p9 }
  0x26   : > { %921 = shalt.err (!%p918_p0)
}
  0x27   : > { %785 = dma.hbm_to_vmem [thread:$0]  (!%p1122_p5), %s195_s30, 256, %s197_s29, %s184_s6  }
  0x28   : > { %205 = sbr.rel (%p1069_p3) target bundleno = 442 (0x1ba), region = 36  ;;  %s1139_s14 = sand.u32 (!%p1069_p3), 1, %s999_s16  }
  0x29   : > { %s664_s26 = sshll.u32 (!%p1069_p3), %s1139_s14, 4  ;;  %s208_s27 = scalar_lea.sflag (!%p1069_p3), [#allocation3], %s1139_s14 }
  0x2a   : > { %s1145_s28 = scalar_lea.vmem (!%p1069_p3), [#allocation2], %s664_s26 }
  0x2d   : > { %982 = dma.done.wait (%p1101_p11), %s208_s27, 256  }
  0x2e   : > { %984 = vsyncadd (%p1101_p11), %s208_s27, 4294967040 }
  0x2f   : > { %986 = dma.done.wait (%p42_p1), [#allocation6], 2064  }
  0x30   : > { %988 = vsyncadd (%p42_p1), [#allocation6], 4294965232  ;;  %v727_v0 = vld [vmem:[#allocation5 + $0x70] sm:$0xf]  ;;  %v761_v1 = vld [vmem:[#allocation5 + $0x74] sm:$0xf0]  ;;  %v397_v52 = vlaneseq }
  0x31   : > { %v760_v2 = vld [vmem:[#allocation5 + $0x74] sm:$0xf]  ;;  %v728_v3 = vor.u32 %v761_v1, %v727_v0  ;;  %v729_v4 = vld [vmem:[#allocation5 + $0x78] sm:$0xf0]  ;;  %v719_v6 = vld [vmem:[#allocation5 + $0x60] sm:$0xf] }
  0x32   : > { %v732_v5 = vor.u32 %v760_v2, %v729_v4  ;;  %v759_v7 = vld [vmem:[#allocation5 + $0x64] sm:$0xf0]  ;;  %v758_v8 = vld [vmem:[#allocation5 + $0x64] sm:$0xf]  ;;  %v721_v9 = vld [vmem:[#allocation5 + $0x68] sm:$0xf0] }
  0x33   : > { %352 = vmatpush.bf16.xpose.msra.mxu0 %v728_v3  ;;  %435 = vmatpush.bf16.msra.mxu2 %v728_v3  ;;  %v720_v10 = vor.u32 %v759_v7, %v719_v6  ;;  %v724_v11 = vor.u32 %v758_v8, %v721_v9  ;;  %v711_v12 = vld [vmem:[#allocation5 + $0x50] sm:$0xf]  ;;  %v757_v13 = vld [vmem:[#allocation5 + $0x54] sm:$0xf0]  ;;  %v756_v14 = vld [vmem:[#allocation5 + $0x54] sm:$0xf] }
  0x34   : > { %365 = vmatpush.bf16.xpose.msra.mxu1 %v732_v5  ;;  %448 = vmatpush.bf16.msra.mxu3 %v732_v5  ;;  %v713_v15 = vld [vmem:[#allocation5 + $0x58] sm:$0xf0]  ;;  %v712_v16 = vor.u32 %v757_v13, %v711_v12  ;;  %v703_v18 = vld [vmem:[#allocation5 + $0x40] sm:$0xf]  ;;  %v755_v19 = vld [vmem:[#allocation5 + $0x44] sm:$0xf0] }
  0x35   : > { %v716_v17 = vor.u32 %v756_v14, %v713_v15  ;;  %v754_v20 = vld [vmem:[#allocation5 + $0x44] sm:$0xf]  ;;  %v705_v21 = vld [vmem:[#allocation5 + $0x48] sm:$0xf0]  ;;  %v704_v22 = vor.u32 %v755_v19, %v703_v18  ;;  %v695_v24 = vld [vmem:[#allocation5 + $0x30] sm:$0xf] }
  0x36   : > { %v708_v23 = vor.u32 %v754_v20, %v705_v21  ;;  %v753_v25 = vld [vmem:[#allocation5 + $0x34] sm:$0xf0]  ;;  %v752_v26 = vld [vmem:[#allocation5 + $0x34] sm:$0xf]  ;;  %v697_v27 = vld [vmem:[#allocation5 + $0x38] sm:$0xf0] }
  0x37   : > { %436 = vmatpush.bf16.msra.mxu2 %v720_v10  ;;  %v696_v28 = vor.u32 %v753_v25, %v695_v24  ;;  %v700_v29 = vor.u32 %v752_v26, %v697_v27  ;;  %v687_v30 = vld [vmem:[#allocation5 + $0x20] sm:$0xf]  ;;  %v751_v31 = vld [vmem:[#allocation5 + $0x24] sm:$0xf0]  ;;  %v750_v32 = vld [vmem:[#allocation5 + $0x24] sm:$0xf] }
  0x38   : > { %449 = vmatpush.bf16.msra.mxu3 %v724_v11  ;;  %v689_v33 = vld [vmem:[#allocation5 + $0x28] sm:$0xf0]  ;;  %v688_v34 = vor.u32 %v751_v31, %v687_v30  ;;  %v679_v36 = vld [vmem:[#allocation5 + $0x10] sm:$0xf]  ;;  %v749_v37 = vld [vmem:[#allocation5 + $0x14] sm:$0xf0] }
  0x39   : > { %v692_v35 = vor.u32 %v750_v32, %v689_v33  ;;  %v748_v38 = vld [vmem:[#allocation5 + $0x14] sm:$0xf]  ;;  %v681_v39 = vld [vmem:[#allocation5 + $0x18] sm:$0xf0]  ;;  %v680_v40 = vor.u32 %v749_v37, %v679_v36  ;;  %v671_v42 = vld [vmem:[#allocation5] sm:$0xf] }
  0x3a   : > { %v684_v41 = vor.u32 %v748_v38, %v681_v39  ;;  %v747_v43 = vld [vmem:[#allocation5 + $0x4] sm:$0xf0]  ;;  %v746_v44 = vld [vmem:[#allocation5 + $0x4] sm:$0xf]  ;;  %v673_v45 = vld [vmem:[#allocation5 + $0x8] sm:$0xf0] }
  0x3b   : > { %353 = vmatpush.bf16.xpose.msra.mxu0 %v720_v10  ;;  %437 = vmatpush.bf16.msra.mxu2 %v712_v16  ;;  %v672_v46 = vor.u32 %v747_v43, %v671_v42  ;;  %v676_v47 = vor.u32 %v746_v44, %v673_v45  ;;  %v248_v48 = vld [vmem:[%s1145_s28] sm:$0xff]  ;;  %v249_v49 = vld [vmem:[%s1145_s28 + $0x8] sm:$0xff]  ;;  %s668_s23 = sshll.u32 %s1064_s22, 3  ;;  %v398_v53 = vshrl.u32 %v397_v52, 7  ;;  %v402_v56 = vand.u32 127, %v397_v52  ;;  %s762_s30 = sshll.u32 %s1064_s22, 4 }
  0x3c   : > { %366 = vmatpush.bf16.xpose.msra.mxu1 %v724_v11  ;;  %450 = vmatpush.bf16.msra.mxu3 %v716_v17  ;;  %v250_v50 = vpack.c.bf16 %v248_v48, %v248_v48  ;;  %v251_v51 = vpack.c.bf16 %v249_v49, %v249_v49  ;;  %v399_v54 = vstv %s668_s23  ;;  %v834_v7 = vld [vmem:[#allocation7] ss:$0 sm:$0xff]  ;;  %v1013_v38 = vmov 1.0|1.0   ;;  %s561_s7 = scalar_lea.hbm %s1199_s4, %s762_s30  ;;  %s246_s22 = scalar_lea.vmem [#allocation8], %s664_s26 }
  0x3d   : > { %v400_v55 = vadd.s32 %v399_v54, %v398_v53  ;;  %v499_v14 = vadd.s32 128, %v402_v56  ;;  %s563_s9 = sshll.u32 %s246_s22, 4  ;;  %s565_s10 = sshll.u32 %s561_s7, 4  ;;  %s564_s9 = int_to_ptr.vmem [resolvable:$true] %s563_s9  ;;  %s566_s10 = int_to_ptr.hbm [resolvable:$true] %s565_s10 }
  0x3e   : > { %s550_s21 = scalar_lea.sflag [#allocation4], %s1139_s14  ;;  %s951_s24 = sshra.s32 %s566_s10, 4  ;;  %s952_s24 = int_to_ptr.hbm [resolvable:$true] %s951_s24 }
  0x3f   : > { %438 = vmatpush.bf16.msra.mxu2 %v704_v22  ;;  %v403_v57 = vmul.u32 16777619, %v400_v55  ;;  %s953_s25 = scalar_lea.hbm %s952_s24, 16  ;;  %s957_s27 = scalar_lea.hbm %s1199_s4, 48 }
  0x40   : > { %451 = vmatpush.bf16.msra.mxu3 %v708_v23  ;;  %p954_p1 = scmp.ne.s32.totalorder %s952_s24, %s953_s25  ;;  %p958_p5 = scmp.lt.s32.totalorder %s952_s24, %s1199_s4 }
  0x41   : > { %v404_v58 = vadd.s32 %v403_v57, %v402_v56  ;;  %p959_p6 = scmp.lt.s32.totalorder %s957_s27, %s953_s25 }
  0x42   : > { %p955_p3 = pnand %p954_p1, %p1108_p2 }
  0x43   : > { %354 = vmatpush.bf16.xpose.msra.mxu0 %v712_v16  ;;  %439 = vmatpush.bf16.msra.mxu2 %v696_v28  ;;  %v405_v59 = vxor.u32 2808649523, %v404_v58  ;;  %v501_v39 = vxor.u32 760504746, %v404_v58  ;;  %p960_p7 = por %p959_p6, %p958_p5 }
  0x44   : > { %367 = vmatpush.bf16.xpose.msra.mxu1 %v716_v17  ;;  %452 = vmatpush.bf16.msra.mxu3 %v700_v29  ;;  %v500_v17 = vadd.s32 %v499_v14, %v403_v57  ;;  %p956_p11 = pneg %p955_p3 }
  0x45   : > { %v406_v60 = vshrl.u32 %v405_v59, 16 }
  0x46   : > { %p961_p8 = pnand %p960_p7, %p956_p11 }
  0x47   : > { %440 = vmatpush.bf16.msra.mxu2 %v688_v34  ;;  %v407_v61 = vxor.u32 %v406_v60, %v405_v59 }
  0x48   : > { %453 = vmatpush.bf16.msra.mxu3 %v692_v35 }
  0x49   : > { %v408_v62 = vmul.u32 2146121005, %v407_v61 }
  0x4b   : > { %355 = vmatpush.bf16.xpose.msra.mxu0 %v704_v22  ;;  %441 = vmatpush.bf16.msra.mxu2 %v680_v40  ;;  %v409_v63 = vshrl.u32 %v408_v62, 15 }
  0x4c   : > { %368 = vmatpush.bf16.xpose.msra.mxu1 %v708_v23  ;;  %454 = vmatpush.bf16.msra.mxu3 %v684_v41 }
  0x4d   : > { %v410_v0 = vxor.u32 %v409_v63, %v408_v62  ;;  %v429_v63 = vld [vmem:[%s1198_s3] sm:$0x3] }
  0x4f   : > { %442 = vmatpush.bf16.msra.mxu2 %v672_v46  ;;  %v411_v1 = vmul.u32 2221713035, %v410_v0 }
  0x50   : > { %455 = vmatpush.bf16.msra.mxu3 %v676_v47 }
  0x51   : > { %v412_v2 = vshrl.u32 %v411_v1, 16 }
  0x53   : > { %356 = vmatpush.bf16.xpose.msra.mxu0 %v696_v28  ;;  %v413_v3 = vxor.u32 %v412_v2, %v411_v1  ;;  %v431_v2 = vperm.slane %v429_v63, 0 }
  0x54   : > { %369 = vmatpush.bf16.xpose.msra.mxu1 %v700_v29 }
  0x55   : > { %v414_v4 = vadd.s32 2654435769, %v413_v3  ;;  %v432_v3 = vperm.slane %v429_v63, 1 }
  0x57   : > { %v415_v5 = vshrl.u32 %v414_v4, 16 }
  0x59   : > { %v416_v6 = vxor.u32 %v415_v5, %v414_v4 }
  0x5b   : > { %357 = vmatpush.bf16.xpose.msra.mxu0 %v688_v34  ;;  %v417_v8 = vmul.u32 2146121005, %v416_v6 }
  0x5c   : > { %370 = vmatpush.bf16.xpose.msra.mxu1 %v692_v35 }
  0x5d   : > { %v418_v12 = vshrl.u32 %v417_v8, 15 }
  0x5f   : > { %v419_v16 = vxor.u32 %v418_v12, %v417_v8 }
  0x61   : > { %v420_v20 = vmul.u32 2221713035, %v419_v16 }
  0x63   : > { %358 = vmatpush.bf16.xpose.msra.mxu0 %v680_v40  ;;  %v421_v22 = vshrl.u32 %v420_v20, 16  ;;  %v502_v40 = vxor.u32 760504746, %v500_v17 }
  0x64   : > { %371 = vmatpush.bf16.xpose.msra.mxu1 %v684_v41  ;;  %v503_v41 = vshrl.u32 %v501_v39, 16 }
  0x65   : > { %v422_v24 = vxor.u32 %v421_v22, %v420_v20  ;;  %v504_v42 = vshrl.u32 %v502_v40, 16 }
  0x66   : > { %v505_v43 = vxor.u32 %v503_v41, %v501_v39 }
  0x67   : > { %v423_v25 = vshrl.u32 %v422_v24, 8  ;;  %v506_v45 = vxor.u32 %v504_v42, %v502_v40 }
  0x68   : > { %v507_v44 = vmul.u32 2146121005, %v505_v43 }
  0x69   : > { %v424_v29 = vcvt.s32.f32 %v423_v25 }
  0x6b   : > { %359 = vmatpush.bf16.xpose.msra.mxu0 %v672_v46  ;;  %v425_v34 = vmul.f32 5.9604645e-08, %v424_v29  ;;  %v508_v46 = vmul.u32 2146121005, %v506_v45 }
  0x6c   : > { %372 = vmatpush.bf16.xpose.msra.mxu1 %v676_v47  ;;  %v509_v47 = vshrl.u32 %v507_v44, 15 }
  0x6d   : > { %v510_v48 = vshrl.u32 %v508_v46, 15 }
  0x6e   : > { %v511_v49 = vxor.u32 %v509_v47, %v507_v44 }
  0x72   : > { %360 = vmatmul.bf16.vlgmr.msra.gmra.mxu0 %v250_v50  ;;  %v512_v50 = vxor.u32 %v510_v48, %v508_v46 }
  0x73   : > { %373 = vmatmul.bf16.vlgmr.msra.gmra.mxu1 %v251_v51  ;;  %v513_v51 = vmul.u32 2221713035, %v511_v49 }
  0x74   : > { %v514_v52 = vmul.u32 2221713035, %v512_v50 }
  0x75   : > { %v515_v53 = vshrl.u32 %v513_v51, 16 }
  0x76   : > { %v516_v54 = vshrl.u32 %v514_v52, 16 }
  0x77   : > { %v517_v55 = vxor.u32 %v515_v53, %v513_v51 }
  0x78   : > { %v518_v56 = vxor.u32 %v516_v54, %v514_v52  ;;  %v1014_v52 = vmov 0.0  }
  0x79   : > { %v519_v57 = vadd.s32 2654435769, %v517_v55 }
  0x7a   : > { %v520_v59 = vadd.s32 2654435769, %v518_v56 }
  0x7b   : > { %v521_v58 = vshrl.u32 %v519_v57, 16 }
  0x7c   : > { %v522_v60 = vshrl.u32 %v520_v59, 16 }
  0x7d   : > { %v523_v61 = vxor.u32 %v521_v58, %v519_v57 }
  0x7e   : > { %v524_v62 = vxor.u32 %v522_v60, %v520_v59 }
  0x7f   : > { %v525_v0 = vmul.u32 2146121005, %v523_v61 }
  0x80   : > { %v526_v1 = vmul.u32 2146121005, %v524_v62 }
  0x81   : > { %v527_v4 = vshrl.u32 %v525_v0, 15 }
  0x83   : > { %v529_v12 = vxor.u32 %v527_v4, %v525_v0 }
  0x85   : > { %v531_v14 = vmul.u32 2221713035, %v529_v12 }
  0xef   : > { %v361_v9 = vpop.f32.mrf.mxu0 }
  0xf0   : > { %v362_v10 = vadd.f32 %v834_v7, %v361_v9  ;;  %v374_v11 = vpop.f32.mrf.mxu1  ;;  %v528_v7 = vshrl.u32 %v526_v1, 15 }
  0xf2   : > { %v375_v13 = vadd.f32 %v374_v11, %v362_v10 }
  0xf4   : > { %v733_v15 = vmul.f32 -1.442695, %v375_v13  ;;  %v530_v13 = vxor.u32 %v528_v7, %v526_v1 }
  0xf6   : > { %835 = vpow2.f32 %v733_v15  ;;  %v532_v17 = vmul.u32 2221713035, %v530_v13 }
  0xf7   : > { %v363_v18 = vpop.f32.mrf.mxu0 }
  0xf8   : > { %v376_v19 = vpop.f32.mrf.mxu1  ;;  %v534_v22 = vshrl.u32 %v532_v17, 16 }
  0xf9   : > { %v533_v19 = vshrl.u32 %v531_v14, 16 }
  0xfa   : > { %v536_v25 = vxor.u32 %v534_v22, %v532_v17 }
  0xfb   : > { %v535_v24 = vxor.u32 %v533_v19, %v531_v14 }
  0xfc   : > { %v836_v21 = vpop.eup %835 }
  0xfd   : > { %v381_v23 = vadd.f32 1.0, %v836_v21 }
  0xff   : > { %837 = vrcp.f32 %v381_v23  ;;  %v393_v30 = vand.u32 2147483648, %v381_v23  ;;  %v391_v32 = vand.u32 2147483647, %v381_v23  ;;  %vm387_vm1 = vweird.f32 %v381_v23 }
 0x101   : > { %v394_v35 = vor.u32 1.1754944e-38, %v393_v30  ;;  %vm392_vm3 = vcmp.eq.f32.partialorder %v391_v32, 8.507059e+37 }
 0x105   : > { %v838_v26 = vpop.eup %837 }
 0x106   : > { %v383_v27 = vmul.f32 %v838_v26, %v381_v23  ;;  %vm388_vm0 = vweird.f32 %v838_v26 }
 0x107   : > { %vm389_vm2 = vmor %vm387_vm1, %vm388_vm0 }
 0x108   : > { %v384_v28 = vsub.f32 1.0, %v383_v27 }
 0x10a   : > { %v385_v31 = vmul.f32 %v838_v26, %v384_v28  ;;  %v538_v28 = vshrl.u32 %v536_v25, 8 }
 0x10c   : > { %v386_v33 = vadd.f32 %v838_v26, %v385_v31 }
 0x10e   : > { %v390_v36 = vsel %vm389_vm2, %v838_v26, %v386_v33  ;;  %v537_v26 = vshrl.u32 %v535_v24, 8 }
 0x10f   : > { %v395_v37 = vsel %vm392_vm3, %v394_v35, %v390_v36  ;;  %v540_v36 = vcvt.s32.f32 %v538_v28 }
 0x110   : > { %vm426_vm4 = vcmp.lt.f32.partialorder %v425_v34, %v395_v37  ;;  %v539_v33 = vcvt.s32.f32 %v537_v26 }
 0x111   : > { %vm734_vm5 = vmpackc.low %vm426_vm4, %vm426_vm4  ;;  %v542_v46 = vmul.f32 5.9604645e-08, %v540_v36 }
 0x112   : > { %735 = vmatmul.msk.bf16.vlgmr.msra.gmra.mxu2 %vm734_vm5, %v1013_v38  ;;  %737 = vmatmul.msk.bf16.vlgmr.msra.gmra.mxu3 %vm734_vm5, %v1013_v38  ;;  %v541_v43 = vmul.f32 5.9604645e-08, %v539_v33 }
 0x195   : > { %v444_v5 = vpop.f32.mrf.mxu2  ;;  %v457_v6 = vpop.f32.mrf.mxu3 }
 0x196   : > { %v445_v8 = vadd.f32 %v444_v5, %v431_v2  ;;  %v458_v9 = vadd.f32 %v457_v6, %v432_v3 }
 0x198   : > { %v738_v10 = vmul.f32 -1.442695, %v445_v8  ;;  %v739_v11 = vmul.f32 -1.442695, %v458_v9 }
 0x19a   : > { %839 = vpow2.f32 %v738_v10 }
 0x19b   : > { %841 = vpow2.f32 %v739_v11 }
 0x19d   : > { %v446_v15 = vpop.f32.mrf.mxu2  ;;  %v459_v16 = vpop.f32.mrf.mxu3 }
 0x1a0   : > { %v840_v18 = vpop.eup %839 }
 0x1a1   : > { %v842_v20 = vpop.eup %841  ;;  %v467_v21 = vadd.f32 1.0, %v840_v18 }
 0x1a2   : > { %v468_v23 = vadd.f32 1.0, %v842_v20 }
 0x1a3   : > { %843 = vrcp.f32 %v467_v21  ;;  %v480_v34 = vand.u32 2147483648, %v467_v21  ;;  %v478_v39 = vand.u32 2147483647, %v467_v21  ;;  %vm474_vm8 = vweird.f32 %v467_v21 }
 0x1a4   : > { %845 = vrcp.f32 %v468_v23  ;;  %v495_v38 = vand.u32 2147483648, %v468_v23  ;;  %v493_v41 = vand.u32 2147483647, %v468_v23  ;;  %vm489_vm10 = vweird.f32 %v468_v23 }
 0x1a5   : > { %v481_v44 = vor.u32 1.1754944e-38, %v480_v34  ;;  %vm479_vm12 = vcmp.eq.f32.partialorder %v478_v39, 8.507059e+37 }
 0x1a6   : > { %v496_v47 = vor.u32 1.1754944e-38, %v495_v38  ;;  %vm494_vm13 = vcmp.eq.f32.partialorder %v493_v41, 8.507059e+37 }
 0x1a9   : > { %v844_v27 = vpop.eup %843 }
 0x1aa   : > { %v846_v29 = vpop.eup %845  ;;  %v470_v30 = vmul.f32 %v844_v27, %v467_v21  ;;  %vm475_vm6 = vweird.f32 %v844_v27 }
 0x1ab   : > { %v485_v31 = vmul.f32 %v846_v29, %v468_v23  ;;  %vm490_vm7 = vweird.f32 %v846_v29  ;;  %vm476_vm9 = vmor %vm474_vm8, %vm475_vm6 }
 0x1ac   : > { %v471_v32 = vsub.f32 1.0, %v470_v30  ;;  %vm491_vm11 = vmor %vm489_vm10, %vm490_vm7 }
 0x1ad   : > { %v486_v35 = vsub.f32 1.0, %v485_v31 }
 0x1ae   : > { %v472_v37 = vmul.f32 %v844_v27, %v471_v32 }
 0x1af   : > { %v487_v40 = vmul.f32 %v846_v29, %v486_v35 }
 0x1b0   : > { %v473_v42 = vadd.f32 %v844_v27, %v472_v37 }
 0x1b1   : > { %v488_v45 = vadd.f32 %v846_v29, %v487_v40 }
 0x1b2   : > { %v477_v48 = vsel %vm476_vm9, %v844_v27, %v473_v42 }
 0x1b3   : > { %v482_v49 = vsel %vm479_vm12, %v481_v44, %v477_v48  ;;  %v492_v50 = vsel %vm491_vm11, %v846_v29, %v488_v45 }
 0x1b4   : > { %v497_v51 = vsel %vm494_vm13, %v496_v47, %v492_v50  ;;  %vm543_vm14 = vcmp.lt.f32.partialorder %v541_v43, %v482_v49 }
 0x1b5   : > { %vm544_vm15 = vcmp.lt.f32.partialorder %v542_v46, %v497_v51  ;;  %v545_v53 = vsel %vm543_vm14, 1.0, %v1014_v52 }
 0x1b6   : > { %v546_v54 = vsel %vm544_vm15, 1.0, %v1014_v52  ;;  %547 = vst [vmem:[%s246_s22] sm:$0xff] %v545_v53 }
 0x1b7   : > { %548 = vst [vmem:[%s246_s22 + $0x8] sm:$0xff] %v546_v54 }
 0x1b8   : > { %964 = shalt.err (!%p961_p8)
}
 0x1b9   : > { %773 = dma.vmem_to_hbm [thread:$0]  (%p1108_p2), %s564_s9, 256, %s566_s10, %s550_s21  }
 0x1ba PF: > { %p795_p9 = scmp.ge.s32.totalorder %s1007_s18, 2  ;;  %s577_s14 = sand.u32 1, %s995_s15  }
 0x1bb   : > { %s578_s13 = scalar_lea.sflag [#allocation4], %s577_s14 }
 0x1bc   : > { %p787_p10 = pnand %p795_p9, %p1112_p4 }
 0x1be   : > { %p788_p12 = pneg %p787_p10 }
 0x1c0   : > { %990 = dma.done.wait (%p788_p12), %s578_s13, 256  }
 0x1c1   : > { %992 = vsyncadd (%p788_p12), %s578_s13, 4294967040  ;;  %p18_p13 = scmp.ge.s32.totalorder %s1082_s8, 5   ;;  %s1206_s15 = smov %s999_s16 }
 0x1c2   : > { %s1207_s16 = smov %s1003_s17  ;;  %s1208_s17 = smov %s1093_s11 }
 0x1c3   : > { %s1209_s18 = smov %s1082_s8  ;;  %20 = sbr.rel (!%p18_p13) target bundleno = 6 (0x6), region = 89 }
 0x1c8   :  { %584 = vsyncpa [#allocation3], 1 }
 0x1c9   :  { %586 = vsyncpa [#allocation3 + $0x1], 1 }
 0x1ca   :  { %587 = vsyncpa [#allocation6], 1 }
 0x1cb   :  { %588 = vsyncpa [#allocation4], 1 }
 0x1cc   :  { %590 = vsyncpa [#allocation4 + $0x1], 1 }

</bundles_post_ra>
